<compile_context>
chip_gen: v7x
topology: tpu7x:2x2x1
jax: 0.10.0
libtpu: 0.0.40
codegen_flags: <defaults>
</compile_context>

<pallas_src>
import functools

import jax
import jax.numpy as jnp
from jax.experimental import pallas as pl
from jax.experimental.pallas import tpu as pltpu


# --------------------------------------------------------------------------
# In-kernel math helpers
# --------------------------------------------------------------------------
def _ipow(base, n):
    """base**n for static integer n >= 0 via power-by-squaring (VPU muls only).

    Matches torch.pow semantics including 0**0 == 1.
    """
    if n == 0:
        return jnp.ones_like(base)
    result = None
    cur = base
    while n > 0:
        if n & 1:
            result = cur if result is None else result * cur
        n >>= 1
        if n:
            cur = cur * cur
    return result


def _asym_weight(p, is_target, gamma_pos, gamma_neg):
    """Asymmetric focusing weight.

    Since `targets` is one-hot, 1 - xs_pos - xs_neg is (1 - p) on the target
    class and p elsewhere, raised to gamma_pos / gamma_neg respectively.
    """
    base_pos = 1.0 - p
    base_neg = p

    def _pow(base, g):
        gf = float(g)
        if gf.is_integer() and gf >= 0:
            return _ipow(base, int(gf))
        # Non-integer fallback (EUP path).  torch.pow(0, g>0) == 0; the clamp
        # gives ~1e-30**g which is numerically indistinguishable here.
        return jnp.exp(gf * jnp.log(jnp.maximum(base, 1e-30)))

    return jnp.where(is_target, _pow(base_pos, gamma_pos), _pow(base_neg, gamma_neg))


def _row_loss(x, labels, gamma_pos, gamma_neg, eps):
    """Per-row asymmetric single-label loss for one (T, C) tile. Returns (T, 1)."""
    t, c = x.shape

    # log_softmax(dim=-1); keep exp(z) around so we don't exp() twice.
    m = jnp.max(x, axis=-1, keepdims=True)
    z = x - m
    ez = jnp.exp(z)                                     # single EUP exp / element
    sum_ez = jnp.sum(ez, axis=-1, keepdims=True)
    log_preds = z - jnp.log(sum_ez)                     # (T, C)
    p = ez / sum_ez                                     # probabilities, no 2nd exp

    # one-hot targets via iota == label (scatter equivalent)
    cls_idx = jax.lax.broadcasted_iota(jnp.int32, (t, c), 1)
    is_target = cls_idx == labels                       # labels is (T, 1)

    w = _asym_weight(p, is_target, gamma_pos, gamma_neg)
    log_preds_w = log_preds * w

    # label smoothing applied AFTER the focusing weight (matches the in-place
    # mul_/add_ ordering in the PyTorch module)
    targets = is_target.astype(jnp.float32)
    if eps > 0:
        targets = targets * (1.0 - eps) + eps / c

    return -jnp.sum(targets * log_preds_w, axis=-1, keepdims=True)  # (T, 1)


# --------------------------------------------------------------------------
# Kernels
# --------------------------------------------------------------------------
def _asl_mean_kernel(yhat_ref, y_ref, o_ref, acc_ref, *,
                     gamma_pos, gamma_neg, eps, n_valid, tile_n):
    i = pl.program_id(0)

    @pl.when(i == 0)
    def _():
        acc_ref[0] = 0.0

    x = yhat_ref[...].astype(jnp.float32)               # (TILE_N, C)
    labels = y_ref[...]                                 # (TILE_N, 1) int32
    loss = _row_loss(x, labels, gamma_pos, gamma_neg, eps)

    # Mask out padded rows so they contribute nothing to the mean.
    row = i * tile_n + jax.lax.broadcasted_iota(jnp.int32, loss.shape, 0)
    loss = jnp.where(row < n_valid, loss, 0.0)

    acc_ref[0] = acc_ref[0] + jnp.sum(loss)

    @pl.when(i == pl.num_programs(0) - 1)
    def _():
        o_ref[0] = acc_ref[0] / float(n_valid)          # divide by the TRUE N


def _asl_none_kernel(yhat_ref, y_ref, o_ref, *, gamma_pos, gamma_neg, eps):
    x = yhat_ref[...].astype(jnp.float32)
    labels = y_ref[...]
    o_ref[...] = _row_loss(x, labels, gamma_pos, gamma_neg, eps)
    # TODO(synk): for very small C a lane-dense (1, TILE_N) output layout would
    # avoid masked vst.msk partial stores; kept (TILE_N, 1) for robustness.


# --------------------------------------------------------------------------
# Wrapper
# --------------------------------------------------------------------------
def _round_up(x, m):
    return -(-x // m) * m


def asymmetric_loss_single_label(y_hat, y, *, gamma_pos=1, gamma_neg=4,
                                 eps=0.1, reduction="mean"):
    """Pallas TPU implementation of AsymmetricLossSingleLabel.forward."""
    if reduction not in ("mean", "none"):
        raise ValueError(f"unsupported reduction: {reduction!r}")

    n, c = y_hat.shape
    y2d = y.astype(jnp.int32).reshape(n, 1)

    # Tile size: ~2 MiB of f32 logits per block, multiple of 8 sublanes, capped
    # at 1024 rows and at the (padded) batch size.  With 2x double-buffered
    # inputs plus a few live temporaries this stays well under 32 MiB VMEM on
    # every TPU generation while keeping per-step overhead (~0.35 us) amortized.
    bytes_per_row = 4 * c
    tile_n = max(8, min(1024, (2 * 1024 * 1024) // max(bytes_per_row, 1)))
    tile_n = max(8, (tile_n // 8) * 8)
    tile_n = min(tile_n, _round_up(n, 8))

    n_pad = _round_up(n, tile_n)
    if n_pad != n:
        y_hat_p = jnp.pad(y_hat, ((0, n_pad - n), (0, 0)))
        y2d_p = jnp.pad(y2d, ((0, n_pad - n), (0, 0)))
    else:
        y_hat_p, y2d_p = y_hat, y2d

    grid = (n_pad // tile_n,)
    in_specs = [
        pl.BlockSpec((tile_n, c), lambda i: (i, 0)),
        pl.BlockSpec((tile_n, 1), lambda i: (i, 0)),
    ]

    out_bytes = 4 if reduction == "mean" else 4 * n_pad
    cost = pl.CostEstimate(
        flops=int(14 * n_pad * c),
        transcendentals=int(n_pad * c + n_pad),          # one exp/elem + one log/row
        bytes_accessed=int(y_hat_p.size * y_hat_p.dtype.itemsize
                           + y2d_p.size * 4 + out_bytes),
    )

    if reduction == "mean":
        kernel = functools.partial(
            _asl_mean_kernel,
            gamma_pos=float(gamma_pos), gamma_neg=float(gamma_neg),
            eps=float(eps), n_valid=int(n), tile_n=int(tile_n),
        )
        out = pl.pallas_call(
            kernel,
            out_shape=jax.ShapeDtypeStruct((1,), jnp.float32),
            grid=grid,
            in_specs=in_specs,
            out_specs=pl.BlockSpec(memory_space=pltpu.MemorySpace.SMEM),
            scratch_shapes=[pltpu.SMEM((1,), jnp.float32)],
            compiler_params=pltpu.CompilerParams(
                dimension_semantics=("arbitrary",),      # SMEM accumulator carry
                vmem_limit_bytes=32 * 1024 * 1024,
            ),
            cost_estimate=cost,
        )(y_hat_p, y2d_p)
        return out[0]

    # reduction == "none"
    kernel = functools.partial(
        _asl_none_kernel,
        gamma_pos=float(gamma_pos), gamma_neg=float(gamma_neg), eps=float(eps),
    )
    out = pl.pallas_call(
        kernel,
        out_shape=jax.ShapeDtypeStruct((n_pad, 1), jnp.float32),
        grid=grid,
        in_specs=in_specs,
        out_specs=pl.BlockSpec((tile_n, 1), lambda i: (i, 0)),
        compiler_params=pltpu.CompilerParams(
            dimension_semantics=("parallel",),           # shard across TCs (v7x)
            vmem_limit_bytes=32 * 1024 * 1024,
        ),
        cost_estimate=cost,
    )(y_hat_p, y2d_p)
    return out[:n, 0]


# --------------------------------------------------------------------------
# Pure-JAX reference (replicates the PyTorch module exactly)
# --------------------------------------------------------------------------
def _reference(y_hat, y, gamma_pos=1, gamma_neg=4, eps=0.1, reduction="mean"):
    n, c = y_hat.shape
    log_preds = jax.nn.log_softmax(y_hat, axis=-1)
    targets = jax.nn.one_hot(y, c, dtype=y_hat.dtype)
    anti = 1.0 - targets
    xs_pos = jnp.exp(log_preds) * targets
    xs_neg = (1.0 - jnp.exp(log_preds)) * anti
    w = jnp.power(1.0 - xs_pos - xs_neg, gamma_pos * targets + gamma_neg * anti)
    lp = log_preds * w
    t_sm = targets * (1.0 - eps) + eps / c if eps > 0 else targets
    loss = -(t_sm * lp).sum(axis=-1)
    return loss.mean() if reduction == "mean" else loss


if __name__ == "__main__":
    key = jax.random.PRNGKey(0)
    k1, k2, k3, k4 = jax.random.split(key, 4)

    # Case 1: batch=8, classes=32 (tile == full batch), mean + none reductions.
    N, C = 8, 32
    y_hat = jax.random.normal(k1, (N, C), dtype=jnp.float32)
    y = jax.random.randint(k2, (N,), 0, C, dtype=jnp.int32)

    loss_mean = jax.block_until_ready(asymmetric_loss_single_label(y_hat, y))
    ref_mean = _reference(y_hat, y)
    assert jnp.allclose(loss_mean, ref_mean, rtol=1e-5, atol=1e-5), (loss_mean, ref_mean)

    loss_none = jax.block_until_ready(
        asymmetric_loss_single_label(y_hat, y, reduction="none"))
    ref_none = _reference(y_hat, y, reduction="none")
    assert jnp.allclose(loss_none, ref_none, rtol=1e-5, atol=1e-5), (loss_none, ref_none)

    # Case 2: batch=13 (not a multiple of 8) exercises the padding + masking path.
    N2, C2 = 13, 32
    y_hat2 = jax.random.normal(k3, (N2, C2), dtype=jnp.float32)
    y2 = jax.random.randint(k4, (N2,), 0, C2, dtype=jnp.int32)

    loss2 = jax.block_until_ready(asymmetric_loss_single_label(y_hat2, y2))
    ref2 = _reference(y_hat2, y2)
    assert jnp.allclose(loss2, ref2, rtol=1e-5, atol=1e-5), (loss2, ref2)

    print("KERNEL_OK")
</pallas_src>

<mosaic_0001>
module attributes {stable_mosaic.version = 11 : i64} {
  func.func @_asl_mean_kernel(%arg0: i32, %arg1: memref<8x32xf32, #tpu.memory_space<vmem>>, %arg2: memref<8x1xi32, #tpu.memory_space<vmem>>, %arg3: memref<1xf32, #tpu.memory_space<smem>>, %arg4: memref<1xf32, #tpu.memory_space<smem>>) attributes {dimension_semantics = [#tpu.dimension_semantics<arbitrary>], iteration_bounds = array<i64: 1>, scalar_prefetch = 0 : i64, scratch_operands = 1 : i64, tpu.core_type = #tpu.core_type<tc>, window_params = [{transform_indices = @transform_0, window_bounds = array<i64: 8, 32>}, {transform_indices = @transform_1, window_bounds = array<i64: 8, 1>}, {transform_indices = @transform_2, window_bounds = array<i64: 1>}]} {
    %c0_i32 = arith.constant 0 : i32
    %0 = arith.cmpi eq, %arg0, %c0_i32 : i32
    %1 = arith.extui %0 : i1 to i32
    %c0_i32_0 = arith.constant 0 : i32
    %2 = arith.cmpi ne, %1, %c0_i32_0 : i32
    scf.if %2 {
      %cst_17 = arith.constant 0.000000e+00 : f32
      %c0_18 = arith.constant 0 : index
      %55 = memref.load %arg4[%c0_18] : memref<1xf32, #tpu.memory_space<smem>>
      memref.store %cst_17, %arg4[%c0_18] : memref<1xf32, #tpu.memory_space<smem>>
    } else {
    }
    %c0 = arith.constant 0 : index
    %c0_1 = arith.constant 0 : index
    %3 = vector.load %arg1[%c0, %c0_1] : memref<8x32xf32, #tpu.memory_space<vmem>>, vector<8x32xf32>
    %c0_2 = arith.constant 0 : index
    %c0_3 = arith.constant 0 : index
    %4 = vector.load %arg2[%c0_2, %c0_3] : memref<8x1xi32, #tpu.memory_space<vmem>>, vector<8x1xi32>
    %cst = arith.constant dense<0xFF800000> : vector<8xf32>
    %5 = vector.multi_reduction <maximumf>, %3, %cst [1] : vector<8x32xf32> to vector<8xf32>
    %6 = vector.shape_cast %5 : vector<8xf32> to vector<8x1xf32>
    %7 = vector.broadcast %6 : vector<8x1xf32> to vector<8x32xf32>
    %8 = arith.subf %3, %7 : vector<8x32xf32>
    %9 = math.exp %8 : vector<8x32xf32>
    %cst_4 = arith.constant dense<0.000000e+00> : vector<8xf32>
    %10 = vector.multi_reduction <add>, %9, %cst_4 [1] : vector<8x32xf32> to vector<8xf32>
    %11 = vector.shape_cast %10 : vector<8xf32> to vector<8x1xf32>
    %12 = math.log %11 : vector<8x1xf32>
    %13 = vector.broadcast %12 : vector<8x1xf32> to vector<8x32xf32>
    %14 = arith.subf %8, %13 : vector<8x32xf32>
    %15 = vector.broadcast %11 : vector<8x1xf32> to vector<8x32xf32>
    %16 = arith.divf %9, %15 : vector<8x32xf32>
    %17 = tpu.iota {dimensions = array<i32: 1>} : vector<8x32xi32>
    %18 = vector.broadcast %4 : vector<8x1xi32> to vector<8x32xi32>
    %19 = arith.cmpi eq, %17, %18 : vector<8x32xi32>
    %cst_5 = arith.constant 1.000000e+00 : f32
    %20 = vector.broadcast %cst_5 : f32 to vector<8x32xf32>
    %21 = arith.subf %20, %16 : vector<8x32xf32>
    %22 = arith.mulf %16, %16 : vector<8x32xf32>
    %23 = arith.mulf %22, %22 : vector<8x32xf32>
    %24 = arith.select %19, %21, %23 : vector<8x32xi1>, vector<8x32xf32>
    %25 = arith.mulf %14, %24 : vector<8x32xf32>
    %26 = arith.extui %19 : vector<8x32xi1> to vector<8x32xi32>
    %27 = arith.sitofp %26 : vector<8x32xi32> to vector<8x32xf32>
    %cst_6 = arith.constant 0.899999976 : f32
    %28 = vector.broadcast %cst_6 : f32 to vector<8x32xf32>
    %29 = arith.mulf %27, %28 : vector<8x32xf32>
    %cst_7 = arith.constant 3.125000e-03 : f32
    %30 = vector.broadcast %cst_7 : f32 to vector<8x32xf32>
    %31 = arith.addf %29, %30 : vector<8x32xf32>
    %32 = arith.mulf %31, %25 : vector<8x32xf32>
    %cst_8 = arith.constant dense<0.000000e+00> : vector<8xf32>
    %33 = vector.multi_reduction <add>, %32, %cst_8 [1] : vector<8x32xf32> to vector<8xf32>
    %34 = vector.shape_cast %33 : vector<8xf32> to vector<8x1xf32>
    %cst_9 = arith.constant 0.000000e+00 : f32
    %35 = vector.broadcast %cst_9 : f32 to vector<8x1xf32>
    %36 = arith.subf %35, %34 : vector<8x1xf32>
    %c8_i32 = arith.constant 8 : i32
    %37 = arith.muli %arg0, %c8_i32 : i32
    %38 = tpu.iota {dimensions = array<i32: 0>} : vector<8x1xi32>
    %39 = vector.broadcast %37 : i32 to vector<8x1xi32>
    %40 = arith.addi %39, %38 : vector<8x1xi32>
    %c8_i32_10 = arith.constant 8 : i32
    %41 = vector.broadcast %c8_i32_10 : i32 to vector<8x1xi32>
    %42 = arith.cmpi slt, %40, %41 : vector<8x1xi32>
    %cst_11 = arith.constant 0.000000e+00 : f32
    %43 = vector.broadcast %cst_11 : f32 to vector<8x1xf32>
    %44 = arith.select %42, %36, %43 : vector<8x1xi1>, vector<8x1xf32>
    %c0_12 = arith.constant 0 : index
    %45 = memref.load %arg4[%c0_12] : memref<1xf32, #tpu.memory_space<smem>>
    %46 = vector.shape_cast %44 : vector<8x1xf32> to vector<1x8x1xf32>
    %cst_13 = arith.constant dense<0.000000e+00> : vector<1xf32>
    %47 = vector.multi_reduction <add>, %46, %cst_13 [1, 2] : vector<1x8x1xf32> to vector<1xf32>
    %48 = vector.shape_cast %47 : vector<1xf32> to vector<1x1x1xf32>
    %49 = vector.extract %48[0, 0, 0] : f32 from vector<1x1x1xf32>
    %50 = arith.addf %45, %49 : f32
    %c0_14 = arith.constant 0 : index
    %51 = memref.load %arg4[%c0_14] : memref<1xf32, #tpu.memory_space<smem>>
    memref.store %50, %arg4[%c0_14] : memref<1xf32, #tpu.memory_space<smem>>
    %c0_i32_15 = arith.constant 0 : i32
    %52 = arith.cmpi eq, %arg0, %c0_i32_15 : i32
    %53 = arith.extui %52 : i1 to i32
    %c0_i32_16 = arith.constant 0 : i32
    %54 = arith.cmpi ne, %53, %c0_i32_16 : i32
    scf.if %54 {
      %c0_17 = arith.constant 0 : index
      %55 = memref.load %arg4[%c0_17] : memref<1xf32, #tpu.memory_space<smem>>
      %cst_18 = arith.constant 8.000000e+00 : f32
      %56 = arith.divf %55, %cst_18 : f32
      %c0_19 = arith.constant 0 : index
      %57 = memref.load %arg3[%c0_19] : memref<1xf32, #tpu.memory_space<smem>>
      memref.store %56, %arg3[%c0_19] : memref<1xf32, #tpu.memory_space<smem>>
    } else {
    }
    return
  }
  func.func @transform_0(%arg0: i32) -> (i32, i32) {
    %c0_i32 = arith.constant 0 : i32
    %c0_i32_0 = arith.constant 0 : i32
    return %arg0, %c0_i32 : i32, i32
  }
  func.func @transform_1(%arg0: i32) -> (i32, i32) {
    %c0_i32 = arith.constant 0 : i32
    %c0_i32_0 = arith.constant 0 : i32
    return %arg0, %c0_i32 : i32, i32
  }
  func.func @transform_2(%arg0: i32) -> i32 {
    %c0_i32 = arith.constant 0 : i32
    %c0_i32_0 = arith.constant 0 : i32
    return %c0_i32 : i32
  }
}

</mosaic_0001>

<bundles_post_ra>
// kernel: tpu_custom_call.1
= control target key start
LH: loop header
LB: loop body
LE: loop exit
PB: predicated region body
PF: predicated region fallthrough
CT: control target
= control target key end

     0   :  { %vm20_vm0 = vcmask 261120   ;;  %s164_s0 = inlined_call_operand.vmem [shape: f32[8,32], index: 0, kind: input, shape index: {}]   ;;  %s165_s1 = inlined_call_operand.vmem [shape: s32[8,1], index: 1, kind: input, shape index: {}]   ;;  %s166_s2 = inlined_call_operand.hbm [shape: f32[1], index: 2, kind: output, shape index: {}]  }
   0x1   :  { %v18_v0 = vld [vmem:[%s164_s0] sm:$0xff] }
   0x2   :  { %7 = vsyncpa [#allocation4], 0  ;;  %v21_v1 = vsel %vm20_vm0, %v18_v0, -inf  ;;  %v19_v2 = vld [vmem:[%s165_s1] sm:$0xff]  ;;  %v125_v3 = vmov 0   ;;  %v35_v10 = vlaneseq  ;;  %v126_v14 = vmov 0.0  }
   0x3   :  { %22 = vmax.xlane.f32.xlu0 %v21_v1  ;;  %105 = vset.pattern.permute.xlu1 %v125_v3  ;;  %vm63_vm2 = vcmask 7168   ;;  %s113_s15 = scalar_lea.hbm %s166_s2, 16 }
   0x4   :  { %106 = vset.pattern.permute.xlu0 %v125_v3  ;;  %38 = vperm.xlu1 %105, %v19_v2   ;;  %v36_v11 = vand.u32 127, %v35_v10  ;;  %p114_p0 = scmp.ne.s32.totalorder %s166_s2, %s113_s15  ;;  %p117_p1 = scmp.lt.u32.totalorder %s113_s15, %s166_s2 }
   0x6   :  { %p119_p2 = pnand %p117_p1, %p114_p0 }
  0x83   :  { %v39_v12 = vpop.permute.xlu1 %38 }
  0x84   :  { %vm40_vm1 = vcmp.eq.s32.totalorder %v36_v11, %v39_v12 }
  0x85   :  { %v99_v15 = vsel %vm40_vm1, 1.0, %v126_v14 }
  0x86   :  { %v48_v19 = vmul.f32 0.9, %v99_v15 }
  0x88   :  { %v49_v24 = vadd.f32 0.003125, %v48_v19 }
  0x90   :  { %v23_v4 = vpop.xlane.xlu0 %22 }
  0x91   :  { %v24_v5 = vsub.f32 %v18_v0, %v23_v4 }
  0x93   :  { %v25_v6 = vmul.f32 1.442695, %v24_v5 }
  0x95   :  { %107 = vpow2.f32 %v25_v6 }
  0x9f   :  { %v108_v7 = vpop.eup %107 }
  0xa0   :  { %v27_v8 = vsel %vm20_vm0, %v108_v7, 0.0 }
  0xa1   :  { %28 = vadd.xlane.f32.xlu0 %v27_v8 }
 0x12e   :  { %v29_v9 = vpop.xlane.xlu0 %28 }
 0x12f   :  { %109 = vlog2.f32 %v29_v9 }
 0x130   :  { %111 = vrcp.f32 %v29_v9 }
 0x139   :  { %v110_v13 = vpop.eup %109 }
 0x13a   :  { %v112_v16 = vpop.eup %111  ;;  %v31_v18 = vmul.f32 0.6931472, %v110_v13 }
 0x13b   :  { %v34_v17 = vmul.f32 %v112_v16, %v108_v7 }
 0x13c   :  { %v32_v23 = vsub.f32 %v24_v5, %v31_v18 }
 0x13d   :  { %v42_v20 = vmul.f32 %v34_v17, %v34_v17  ;;  %v41_v21 = vsub.f32 1.0, %v34_v17 }
 0x13f   :  { %v43_v22 = vmul.f32 %v42_v20, %v42_v20 }
 0x141   :  { %v44_v25 = vsel %vm40_vm1, %v41_v21, %v43_v22 }
 0x142   :  { %v45_v26 = vmul.f32 %v44_v25, %v32_v23 }
 0x144   :  { %v50_v27 = vmul.f32 %v49_v24, %v45_v26 }
 0x146   :  { %v51_v28 = vsel %vm20_vm0, %v50_v27, 0.0 }
 0x147   :  { %52 = vadd.xlane.f32.xlu1 %v51_v28 }
 0x1d4   :  { %v53_v29 = vpop.xlane.xlu1 %52 }
 0x1d5   :  { %v54_v30 = vsub.f32 0.0, %v53_v29 }
 0x1d7   :  { %v64_v31 = vsel %vm63_vm2, %v54_v30, 0.0 }
 0x1d8   :  { %65 = vadd.xlane.f32.xlu0 %v64_v31 }
 0x265   :  { %v66_v32 = vpop.xlane.xlu0 %65 }
 0x266   :  { %v67_v33 = vrot.slane %v66_v32, 4 }
 0x268   :  { %v68_v34 = vadd.f32 %v67_v33, %v66_v32 }
 0x26a   :  { %v69_v35 = vrot.slane %v68_v34, 2 }
 0x26c   :  { %v70_v36 = vadd.f32 %v69_v35, %v68_v34 }
 0x26e   :  { %v71_v37 = vrot.slane %v70_v36, 1 }
 0x270   :  { %v72_v38 = vadd.f32 %v71_v37, %v70_v36 }
 0x272   :  { %100 = vpush %v72_v38 }
 0x2a3   :  { %s101_s0 = spop %100 }
 0x2a4   :  { %s83_s1 = smul.f32 0.125, %s101_s0 }
 0x2a6   :  { %85 = sst [smem:[#allocation3]] %s83_s1 }
 0x2a7   :  { %122 = shalt.err (!%p119_p2)
}
 0x2a8   :  { %s127_s20 = smov [#allocation3]  }
 0x2a9   :  { %93 = dma.smem_to_hbm %s127_s20, 16, %s166_s2, [#allocation4]  }
 0x2aa   :  { %123 = dma.done.wait [#allocation4], 16  }
 0x2ab   :  { %124 = vsyncadd [#allocation4], 4294967280 }
 0x2ac   :  { %97 = sfence }
 0x2ad   :  { %98 = vsyncpa [#allocation4], 1 }

</bundles_post_ra>
